<compile_context>
chip_gen: v7x
topology: tpu7x:2x2x1
jax: 0.10.0
libtpu: 0.0.40
codegen_flags: <defaults>
</compile_context>

<pallas_src>
import functools

import jax
import jax.numpy as jnp
import numpy as np
from jax.experimental import pallas as pl
from jax.experimental.pallas import tpu as pltpu

H1, H2, H3 = 128, 64, 32   # hidden sizes fixed by the module
PACK_W = 128               # lane-dense packed output: [emb(32) | y(out_dim) | pad]
TB_LARGE = 256             # batch tile for large batches


def _round_up(x, m):
    return ((x + m - 1) // m) * m


def _pick_tb(B):
    # Small batch: one grid step over the whole (sublane-padded) batch.
    # Large batch: 256-row tiles so the parallel grid keeps >= 2 steps (v7x
    # has 2 TensorCores) and every MXU push is full on v6e/v7x.
    if B <= TB_LARGE:
        return _round_up(max(B, 1), 8)
    return TB_LARGE


def _fc_kernel(x_ref,
               w1_ref, b1_ref,
               w2_ref, b2_ref,
               w3_ref, b3_ref,
               w4_ref, b4_ref,
               packed_ref, *, out_dim):
    # bf16 operands feed the MXU; accumulation and elementwise work in f32.
    x = x_ref[...]

    h1 = jnp.dot(x, w1_ref[...], preferred_element_type=jnp.float32) + b1_ref[...]
    h1 = jnp.maximum(h1, 0.0)

    h2 = jnp.dot(h1.astype(jnp.bfloat16), w2_ref[...],
                 preferred_element_type=jnp.float32) + b2_ref[...]
    h2 = jnp.maximum(h2, 0.0)

    h3 = jnp.dot(h2.astype(jnp.bfloat16), w3_ref[...],
                 preferred_element_type=jnp.float32) + b3_ref[...]
    h3 = jnp.maximum(h3, 0.0)          # == self.embedding (pre-sigmoid 32-d)

    z = jnp.dot(h3.astype(jnp.bfloat16), w4_ref[...],
                preferred_element_type=jnp.float32) + b4_ref[...]
    # sigmoid: exp and reciprocal both go to the EUP slot (no VALU divide).
    y = pl.reciprocal(1.0 + jnp.exp(-z), approx=True)

    # One lane-dense (TB, 128) output slab: cols 0:32 = embedding,
    # cols 32:32+out_dim = sigmoid output, rest zero padding.
    packed_ref[...] = jnp.zeros_like(packed_ref)
    packed_ref[:, 0:H3] = h3
    packed_ref[:, H3:H3 + out_dim] = y


def fc_forward(x, params):
    """Runs the fused MLP kernel.  Returns (y_squeezed, embedding)."""
    (w1, b1), (w2, b2), (w3, b3), (w4, b4) = params
    B, in_dim = x.shape
    out_dim = w4.shape[1]
    assert H3 + out_dim <= PACK_W, "output_size too large for packed output slab"

    tb = _pick_tb(B)
    B_pad = _round_up(B, tb)
    if B_pad != B:
        x = jnp.pad(x, ((0, B_pad - B), (0, 0)))

    # bf16 MXU operands; biases stay f32.
    x_bf = x.astype(jnp.bfloat16)
    w1b, w2b, w3b, w4b = (w.astype(jnp.bfloat16) for w in (w1, w2, w3, w4))

    grid = (B_pad // tb,)
    full = lambda i: (0, 0)    # weights / biases: same block every step
    tile = lambda i: (i, 0)    # activations: tiled along the batch axis

    flops = 2 * B_pad * (in_dim * H1 + H1 * H2 + H2 * H3 + H3 * out_dim)
    bytes_accessed = (
        B_pad * in_dim * 2                                        # x (bf16)
        + 2 * (in_dim * H1 + H1 * H2 + H2 * H3 + H3 * out_dim)    # weights (bf16)
        + 4 * (H1 + H2 + H3 + out_dim)                            # biases (f32)
        + B_pad * PACK_W * 4)                                     # packed output (f32)
    cost = pl.CostEstimate(flops=flops,
                           transcendentals=B_pad * out_dim,
                           bytes_accessed=bytes_accessed)

    packed = pl.pallas_call(
        functools.partial(_fc_kernel, out_dim=out_dim),
        out_shape=jax.ShapeDtypeStruct((B_pad, PACK_W), jnp.float32),
        grid_spec=pltpu.PrefetchScalarGridSpec(
            num_scalar_prefetch=0,
            grid=grid,
            in_specs=[
                pl.BlockSpec((tb, in_dim), tile),
                pl.BlockSpec((in_dim, H1), full),  pl.BlockSpec((1, H1), full),
                pl.BlockSpec((H1, H2), full),      pl.BlockSpec((1, H2), full),
                pl.BlockSpec((H2, H3), full),      pl.BlockSpec((1, H3), full),
                pl.BlockSpec((H3, out_dim), full), pl.BlockSpec((1, out_dim), full),
            ],
            out_specs=pl.BlockSpec((tb, PACK_W), tile),
        ),
        compiler_params=pltpu.CompilerParams(
            dimension_semantics=("parallel",)),
        cost_estimate=cost,
    )(x_bf, w1b, b1, w2b, b2, w3b, b3, w4b, b4)

    emb = packed[:B, 0:H3]
    out = packed[:B, H3:H3 + out_dim]
    # NOTE: for tiny batches (B <= ~32) a pure-XLA path would avoid kernel
    # launch/pad/slice overhead entirely; kept on the Pallas path here so the
    # kernel is exercised.
    # torch .squeeze() removes all size-1 dims (B=1, out_dim=1 -> 0-d scalar).
    return jnp.squeeze(out), emb


def fc_forward_ref(x, params):
    """Pure-JAX f32 reference of the module forward."""
    (w1, b1), (w2, b2), (w3, b3), (w4, b4) = params
    h = jnp.maximum(x @ w1 + b1, 0.0)
    h = jnp.maximum(h @ w2 + b2, 0.0)
    h = jnp.maximum(h @ w3 + b3, 0.0)
    emb = h
    y = jax.nn.sigmoid(h @ w4 + b4)
    return jnp.squeeze(y), emb


def init_params(key, input_size, output_size):
    """Deterministic init mimicking nn.Linear (uniform +/- 1/sqrt(fan_in)).
    Weights stored already transposed: (in, out); biases as (1, out)."""
    dims = [(input_size, H1), (H1, H2), (H2, H3), (H3, output_size)]
    params = []
    for (fan_in, fan_out) in dims:
        key, kw, kb = jax.random.split(key, 3)
        bound = 1.0 / jnp.sqrt(fan_in)
        w = jax.random.uniform(kw, (fan_in, fan_out), jnp.float32, -bound, bound)
        b = jax.random.uniform(kb, (1, fan_out), jnp.float32, -bound, bound)
        params.append((w, b))
    return params


if __name__ == "__main__":
    key = jax.random.PRNGKey(0)
    batch, input_size, output_size = 2, 32, 1

    key, kx = jax.random.split(key)
    x = jax.random.normal(kx, (batch, input_size), jnp.float32)
    params = init_params(key, input_size, output_size)

    y, emb = fc_forward(x, params)
    jax.block_until_ready((y, emb))

    assert y.shape == (batch,), y.shape          # (2, 1) squeezed -> (2,)
    assert emb.shape == (batch, H3), emb.shape   # stored embedding

    # Correctness vs f32 reference (bf16 matmul + approx reciprocal tolerance).
    y_ref, emb_ref = fc_forward_ref(x, params)
    assert np.allclose(np.asarray(y), np.asarray(y_ref), atol=0.1, rtol=0.1)
    assert np.allclose(np.asarray(emb), np.asarray(emb_ref), atol=0.1, rtol=0.1)

    # Exercise the multi-step parallel grid path (TB=256, 3 grid steps).
    key, kx2 = jax.random.split(key)
    x_big = jax.random.normal(kx2, (600, input_size), jnp.float32)
    y_big, emb_big = fc_forward(x_big, params)
    jax.block_until_ready((y_big, emb_big))
    assert y_big.shape == (600,), y_big.shape
    assert emb_big.shape == (600, H3), emb_big.shape

    print("KERNEL_OK")
</pallas_src>

<mosaic_0001>
module attributes {stable_mosaic.version = 11 : i64} {
  func.func @_fc_kernel(%arg0: i32, %arg1: memref<8x32xbf16, #tpu.memory_space<vmem>>, %arg2: memref<32x128xbf16, #tpu.memory_space<vmem>>, %arg3: memref<1x128xf32, #tpu.memory_space<vmem>>, %arg4: memref<128x64xbf16, #tpu.memory_space<vmem>>, %arg5: memref<1x64xf32, #tpu.memory_space<vmem>>, %arg6: memref<64x32xbf16, #tpu.memory_space<vmem>>, %arg7: memref<1x32xf32, #tpu.memory_space<vmem>>, %arg8: memref<32x1xbf16, #tpu.memory_space<vmem>>, %arg9: memref<1x1xf32, #tpu.memory_space<vmem>>, %arg10: memref<8x128xf32, #tpu.memory_space<vmem>>) attributes {dimension_semantics = [#tpu.dimension_semantics<parallel>], iteration_bounds = array<i64: 1>, scalar_prefetch = 0 : i64, scratch_operands = 0 : i64, tpu.core_type = #tpu.core_type<tc>, window_params = [{transform_indices = @transform_0, window_bounds = array<i64: 8, 32>}, {pipeline_mode = #tpu.pipeline_mode<synchronous>, transform_indices = @transform_1, window_bounds = array<i64: 32, 128>}, {pipeline_mode = #tpu.pipeline_mode<synchronous>, transform_indices = @transform_2, window_bounds = array<i64: 1, 128>}, {pipeline_mode = #tpu.pipeline_mode<synchronous>, transform_indices = @transform_3, window_bounds = array<i64: 128, 64>}, {pipeline_mode = #tpu.pipeline_mode<synchronous>, transform_indices = @transform_4, window_bounds = array<i64: 1, 64>}, {pipeline_mode = #tpu.pipeline_mode<synchronous>, transform_indices = @transform_5, window_bounds = array<i64: 64, 32>}, {pipeline_mode = #tpu.pipeline_mode<synchronous>, transform_indices = @transform_6, window_bounds = array<i64: 1, 32>}, {pipeline_mode = #tpu.pipeline_mode<synchronous>, transform_indices = @transform_7, window_bounds = array<i64: 32, 1>}, {pipeline_mode = #tpu.pipeline_mode<synchronous>, transform_indices = @transform_8, window_bounds = array<i64: 1, 1>}, {transform_indices = @transform_9, window_bounds = array<i64: 8, 128>}]} {
    %c0 = arith.constant 0 : index
    %c0_0 = arith.constant 0 : index
    %0 = vector.load %arg1[%c0, %c0_0] : memref<8x32xbf16, #tpu.memory_space<vmem>>, vector<8x32xbf16>
    %c0_1 = arith.constant 0 : index
    %c0_2 = arith.constant 0 : index
    %1 = vector.load %arg2[%c0_1, %c0_2] : memref<32x128xbf16, #tpu.memory_space<vmem>>, vector<32x128xbf16>
    %cst = arith.constant dense<0.000000e+00> : vector<8x128xf32>
    %2 = tpu.matmul %0, %1, %cst {dimension_numbers = #tpu.dot_dimension_numbers<[1], [0], [0], [1], [0, 0, 1, 1], [], []>} : vector<8x32xbf16>, vector<32x128xbf16>, vector<8x128xf32> -> vector<8x128xf32>
    %c0_3 = arith.constant 0 : index
    %c0_4 = arith.constant 0 : index
    %3 = vector.load %arg3[%c0_3, %c0_4] : memref<1x128xf32, #tpu.memory_space<vmem>>, vector<1x128xf32>
    %4 = vector.broadcast %3 : vector<1x128xf32> to vector<8x128xf32>
    %5 = arith.addf %2, %4 : vector<8x128xf32>
    %cst_5 = arith.constant 0.000000e+00 : f32
    %6 = vector.broadcast %cst_5 : f32 to vector<8x128xf32>
    %7 = arith.maximumf %5, %6 : vector<8x128xf32>
    %8 = arith.truncf %7 : vector<8x128xf32> to vector<8x128xbf16>
    %c0_6 = arith.constant 0 : index
    %c0_7 = arith.constant 0 : index
    %9 = vector.load %arg4[%c0_6, %c0_7] : memref<128x64xbf16, #tpu.memory_space<vmem>>, vector<128x64xbf16>
    %cst_8 = arith.constant dense<0.000000e+00> : vector<8x64xf32>
    %10 = tpu.matmul %8, %9, %cst_8 {dimension_numbers = #tpu.dot_dimension_numbers<[1], [0], [0], [1], [0, 0, 1, 1], [], []>} : vector<8x128xbf16>, vector<128x64xbf16>, vector<8x64xf32> -> vector<8x64xf32>
    %c0_9 = arith.constant 0 : index
    %c0_10 = arith.constant 0 : index
    %11 = vector.load %arg5[%c0_9, %c0_10] : memref<1x64xf32, #tpu.memory_space<vmem>>, vector<1x64xf32>
    %12 = vector.broadcast %11 : vector<1x64xf32> to vector<8x64xf32>
    %13 = arith.addf %10, %12 : vector<8x64xf32>
    %cst_11 = arith.constant 0.000000e+00 : f32
    %14 = vector.broadcast %cst_11 : f32 to vector<8x64xf32>
    %15 = arith.maximumf %13, %14 : vector<8x64xf32>
    %16 = arith.truncf %15 : vector<8x64xf32> to vector<8x64xbf16>
    %c0_12 = arith.constant 0 : index
    %c0_13 = arith.constant 0 : index
    %17 = vector.load %arg6[%c0_12, %c0_13] : memref<64x32xbf16, #tpu.memory_space<vmem>>, vector<64x32xbf16>
    %cst_14 = arith.constant dense<0.000000e+00> : vector<8x32xf32>
    %18 = tpu.matmul %16, %17, %cst_14 {dimension_numbers = #tpu.dot_dimension_numbers<[1], [0], [0], [1], [0, 0, 1, 1], [], []>} : vector<8x64xbf16>, vector<64x32xbf16>, vector<8x32xf32> -> vector<8x32xf32>
    %c0_15 = arith.constant 0 : index
    %c0_16 = arith.constant 0 : index
    %19 = vector.load %arg7[%c0_15, %c0_16] : memref<1x32xf32, #tpu.memory_space<vmem>>, vector<1x32xf32>
    %20 = vector.broadcast %19 : vector<1x32xf32> to vector<8x32xf32>
    %21 = arith.addf %18, %20 : vector<8x32xf32>
    %cst_17 = arith.constant 0.000000e+00 : f32
    %22 = vector.broadcast %cst_17 : f32 to vector<8x32xf32>
    %23 = arith.maximumf %21, %22 : vector<8x32xf32>
    %24 = arith.truncf %23 : vector<8x32xf32> to vector<8x32xbf16>
    %c0_18 = arith.constant 0 : index
    %c0_19 = arith.constant 0 : index
    %25 = vector.load %arg8[%c0_18, %c0_19] : memref<32x1xbf16, #tpu.memory_space<vmem>>, vector<32x1xbf16>
    %cst_20 = arith.constant dense<0.000000e+00> : vector<8x1xf32>
    %26 = tpu.matmul %24, %25, %cst_20 {dimension_numbers = #tpu.dot_dimension_numbers<[1], [0], [0], [1], [0, 0, 1, 1], [], []>} : vector<8x32xbf16>, vector<32x1xbf16>, vector<8x1xf32> -> vector<8x1xf32>
    %c0_21 = arith.constant 0 : index
    %c0_22 = arith.constant 0 : index
    %27 = vector.load %arg9[%c0_21, %c0_22] : memref<1x1xf32, #tpu.memory_space<vmem>>, vector<1x1xf32>
    %28 = vector.broadcast %27 : vector<1x1xf32> to vector<8x1xf32>
    %29 = arith.addf %26, %28 : vector<8x1xf32>
    %cst_23 = arith.constant 0.000000e+00 : f32
    %30 = vector.broadcast %cst_23 : f32 to vector<8x1xf32>
    %31 = arith.subf %30, %29 : vector<8x1xf32>
    %32 = math.exp %31 : vector<8x1xf32>
    %cst_24 = arith.constant 1.000000e+00 : f32
    %33 = vector.broadcast %cst_24 : f32 to vector<8x1xf32>
    %34 = arith.addf %33, %32 : vector<8x1xf32>
    %35 = tpu.reciprocal %34 {approx = true} : vector<8x1xf32> -> vector<8x1xf32>
    %cst_25 = arith.constant 0.000000e+00 : f32
    %36 = vector.broadcast %cst_25 : f32 to vector<8x128xf32>
    %c0_26 = arith.constant 0 : index
    %c0_27 = arith.constant 0 : index
    %37 = vector.load %arg10[%c0_26, %c0_27] : memref<8x128xf32, #tpu.memory_space<vmem>>, vector<8x128xf32>
    tpu.vector_store %arg10[%c0_26, %c0_27], %36 {strides = array<i32>} : memref<8x128xf32, #tpu.memory_space<vmem>>, vector<8x128xf32>,
    %c0_28 = arith.constant 0 : index
    %c0_29 = arith.constant 0 : index
    %38 = vector.load %arg10[%c0_28, %c0_29] : memref<8x128xf32, #tpu.memory_space<vmem>>, vector<8x32xf32>
    tpu.vector_store %arg10[%c0_28, %c0_29], %23 {strides = array<i32>} : memref<8x128xf32, #tpu.memory_space<vmem>>, vector<8x32xf32>,
    %c0_30 = arith.constant 0 : index
    %c32 = arith.constant 32 : index
    %39 = vector.load %arg10[%c0_30, %c32] : memref<8x128xf32, #tpu.memory_space<vmem>>, vector<8x1xf32>
    tpu.vector_store %arg10[%c0_30, %c32], %35 {strides = array<i32>} : memref<8x128xf32, #tpu.memory_space<vmem>>, vector<8x1xf32>,
    return
  }
  func.func @transform_0(%arg0: i32) -> (i32, i32) {
    %c0_i32 = arith.constant 0 : i32
    %c0_i32_0 = arith.constant 0 : i32
    return %arg0, %c0_i32 : i32, i32
  }
  func.func @transform_1(%arg0: i32) -> (i32, i32) {
    %c0_i32 = arith.constant 0 : i32
    %c0_i32_0 = arith.constant 0 : i32
    %c0_i32_1 = arith.constant 0 : i32
    return %c0_i32, %c0_i32_0 : i32, i32
  }
  func.func @transform_2(%arg0: i32) -> (i32, i32) {
    %c0_i32 = arith.constant 0 : i32
    %c0_i32_0 = arith.constant 0 : i32
    %c0_i32_1 = arith.constant 0 : i32
    return %c0_i32, %c0_i32_0 : i32, i32
  }
  func.func @transform_3(%arg0: i32) -> (i32, i32) {
    %c0_i32 = arith.constant 0 : i32
    %c0_i32_0 = arith.constant 0 : i32
    %c0_i32_1 = arith.constant 0 : i32
    return %c0_i32, %c0_i32_0 : i32, i32
  }
  func.func @transform_4(%arg0: i32) -> (i32, i32) {
    %c0_i32 = arith.constant 0 : i32
    %c0_i32_0 = arith.constant 0 : i32
    %c0_i32_1 = arith.constant 0 : i32
    return %c0_i32, %c0_i32_0 : i32, i32
  }
  func.func @transform_5(%arg0: i32) -> (i32, i32) {
    %c0_i32 = arith.constant 0 : i32
    %c0_i32_0 = arith.constant 0 : i32
    %c0_i32_1 = arith.constant 0 : i32
    return %c0_i32, %c0_i32_0 : i32, i32
  }
  func.func @transform_6(%arg0: i32) -> (i32, i32) {
    %c0_i32 = arith.constant 0 : i32
    %c0_i32_0 = arith.constant 0 : i32
    %c0_i32_1 = arith.constant 0 : i32
    return %c0_i32, %c0_i32_0 : i32, i32
  }
  func.func @transform_7(%arg0: i32) -> (i32, i32) {
    %c0_i32 = arith.constant 0 : i32
    %c0_i32_0 = arith.constant 0 : i32
    %c0_i32_1 = arith.constant 0 : i32
    return %c0_i32, %c0_i32_0 : i32, i32
  }
  func.func @transform_8(%arg0: i32) -> (i32, i32) {
    %c0_i32 = arith.constant 0 : i32
    %c0_i32_0 = arith.constant 0 : i32
    %c0_i32_1 = arith.constant 0 : i32
    return %c0_i32, %c0_i32_0 : i32, i32
  }
  func.func @transform_9(%arg0: i32) -> (i32, i32) {
    %c0_i32 = arith.constant 0 : i32
    %c0_i32_0 = arith.constant 0 : i32
    return %arg0, %c0_i32 : i32, i32
  }
}

</mosaic_0001>

<bundles_post_ra>
// kernel: tpu_custom_call.1
= control target key start
LH: loop header
LB: loop body
LE: loop exit
PB: predicated region body
PF: predicated region fallthrough
CT: control target
= control target key end

     0   :  { %s693_s0 = inlined_call_operand.vmem [shape: bf16[8,32], index: 0, kind: input, shape index: {}]   ;;  %s694_s1 = inlined_call_operand.vmem [shape: bf16[32,128], index: 1, kind: input, shape index: {}]   ;;  %s695_s2 = inlined_call_operand.vmem [shape: f32[1,128], index: 2, kind: input, shape index: {}]   ;;  %s696_s3 = inlined_call_operand.vmem [shape: bf16[128,64], index: 3, kind: input, shape index: {}]   ;;  %s697_s4 = inlined_call_operand.vmem [shape: f32[1,64], index: 4, kind: input, shape index: {}]   ;;  %s698_s5 = inlined_call_operand.vmem [shape: bf16[64,32], index: 5, kind: input, shape index: {}]   ;;  %s699_s6 = inlined_call_operand.vmem [shape: f32[1,32], index: 6, kind: input, shape index: {}]   ;;  %s700_s7 = inlined_call_operand.vmem [shape: bf16[32,1], index: 7, kind: input, shape index: {}]   ;;  %s701_s8 = inlined_call_operand.<no memory space> [shape: f32[1,1], index: 8, kind: input, shape index: {}]   ;;  %s702_s9 = inlined_call_operand.hbm [shape: f32[8,128], index: 9, kind: output, shape index: {}]  }
   0x1   :  { %v14_v0 = vstv %s701_s8 }
   0x2   :  { %15 = vst [vmem:[#allocation2] sm:$0x1] %v14_v0 }
   0x3   :  { %v492_v1 = vld [vmem:[%s694_s1] sm:$0xff]   ;;  %v536_v2 = vmov 0.0   ;;  %v493_v3 = vld [vmem:[%s694_s1 + $0x8] sm:$0xff]   ;;  %vm537_vm0 = vmmov 0   ;;  %vm60_vm1 = vcmask 261120   ;;  %v496_v7 = vld [vmem:[%s696_s3 + $0x10] sm:$0xff]  }
   0x4   :  { %440 = vmatprep.subr.bf16.mxu0 %v536_v2  ;;  %375 = vst [vmem:[#allocation3] sm:$0xff] %v536_v2  ;;  %448 = vmatprep.subr.bf16.mxu1 %v536_v2  ;;  %v494_v4 = vld [vmem:[%s696_s3] sm:$0xff]   ;;  %v495_v5 = vld [vmem:[%s696_s3 + $0x8] sm:$0xff]   ;;  %v497_v8 = vld [vmem:[%s696_s3 + $0x18] sm:$0xff]  }
   0x5   :  { %441 = vmatpush3.bf16.msra.mxu0 %v492_v1  ;;  %444 = vmatprep.mubr.msk.bf16.mxu0 %vm537_vm0, %v536_v2  ;;  %v36_v6 = vld [vmem:[%s693_s0] sm:$0xf] }
   0x6   :  { %442 = vmatprep.subr.bf16.mxu0 %v536_v2  ;;  %464 = vmatprep.mubr.msk.bf16.mxu1 %vm537_vm0, %v536_v2 }
   0x7   :  { %449 = vmatpush3.bf16.msra.mxu1 %v494_v4 }
   0x8   :  { %450 = vmatprep.subr.bf16.mxu1 %v536_v2 }
   0x9   :  { %443 = vmatpush3.bf16.msra.mxu0 %v493_v3 }
   0xa   :  { %468 = vmatprep.subr.bf16.mxu0 %v536_v2 }
   0xb   :  { %451 = vmatpush3.bf16.msra.mxu1 %v495_v5 }
   0xc   :  { %445 = vmatmul.mubr.msk.bf16.vlgmr.msra.gmra.mrb[0].mxu0 %vm60_vm1, %v36_v6  ;;  %452 = vmatprep.subr.bf16.mxu1 %v536_v2 }
   0xd   :  { %476 = vmatprep.mubr.msk.bf16.mxu0 %vm537_vm0, %v536_v2 }
   0xf   :  { %453 = vmatpush3.bf16.msra.mxu1 %v496_v7 }
  0x10   :  { %454 = vmatprep.subr.bf16.mxu1 %v536_v2 }
  0x11   :  { %16 = vsyncpa [#allocation4], 0  ;;  %v498_v9 = vld [vmem:[%s696_s3 + $0x20] sm:$0xff]   ;;  %v499_v10 = vld [vmem:[%s696_s3 + $0x28] sm:$0xff]   ;;  %vm258_vm2 = vcmask 523264   ;;  %vm381_vm3 = vcmask 269568  }
  0x12   :  { %v500_v11 = vld [vmem:[%s696_s3 + $0x30] sm:$0xff]   ;;  %v501_v12 = vld [vmem:[%s696_s3 + $0x38] sm:$0xff]   ;;  %v502_v13 = vld [vmem:[%s698_s5] sm:$0xff]  }
  0x13   :  { %455 = vmatpush3.bf16.msra.mxu1 %v497_v8  ;;  %469 = vmatpush3.bf16.msra.mxu0 %v502_v13  ;;  %v503_v14 = vld [vmem:[%s698_s5 + $0x8] sm:$0xff]   ;;  %v397_v15 = vld [vmem:[%s695_s2] ss:$0 sm:$0xff]  ;;  %v504_v23 = vld [vmem:[%s698_s5 + $0x10] sm:$0xff]  }
  0x14   :  { %456 = vmatprep.subr.bf16.mxu1 %v536_v2  ;;  %470 = vmatprep.subr.bf16.mxu0 %v536_v2  ;;  %v505_v24 = vld [vmem:[%s698_s5 + $0x18] sm:$0xff]   ;;  %v401_v25 = vld [vmem:[%s697_s4] ss:$0 sm:$0xff]  ;;  %v507_v34 = vld [vmem:[%s700_s7 + $0x8] sm:$0xff]  }
  0x15   :  { %v506_v32 = vld [vmem:[%s700_s7] sm:$0xff]   ;;  %s539_s7 = smov [#allocation3]  }
  0x16   :  { %v410_v35 = vld [vmem:[%s699_s6] ss:$0 sm:$0xff]  ;;  %s538_s6 = smov 32   ;;  %s389_s21 = sshll.u32 %s539_s7, 4  ;;  %s390_s21 = int_to_ptr.vmem [resolvable:$true] %s389_s21 }
  0x17   :  { %457 = vmatpush3.bf16.msra.mxu1 %v498_v9  ;;  %471 = vmatpush3.bf16.msra.mxu0 %v503_v14  ;;  %v416_v43 = vld [vmem:[#allocation2] ss:$0 sm:$0xff]  ;;  %s512_s22 = scalar_lea.vmem %s390_s21, 128  ;;  %p517_p1 = scmp.lt.s32.totalorder %s390_s21, %s390_s21 }
  0x18   :  { %458 = vmatprep.subr.bf16.mxu1 %v536_v2  ;;  %472 = vmatprep.subr.bf16.mxu0 %v536_v2  ;;  %p513_p0 = scmp.ne.s32.totalorder %s390_s21, %s512_s22  ;;  %p518_p2 = scmp.lt.s32.totalorder %s512_s22, %s512_s22 }
  0x1a   :  { %p519_p3 = por %p518_p2, %p517_p1 }
  0x1b   :  { %459 = vmatpush3.bf16.msra.mxu1 %v499_v10  ;;  %473 = vmatpush3.bf16.msra.mxu0 %v504_v23 }
  0x1c   :  { %460 = vmatprep.subr.bf16.mxu1 %v536_v2  ;;  %474 = vmatprep.subr.bf16.mxu0 %v536_v2  ;;  %p520_p4 = pnand %p519_p3, %p513_p0 }
  0x1f   :  { %461 = vmatpush3.bf16.msra.mxu1 %v500_v11  ;;  %475 = vmatpush3.bf16.msra.mxu0 %v505_v24 }
  0x20   :  { %462 = vmatprep.subr.bf16.mxu1 %v536_v2  ;;  %480 = vmatprep.subr.bf16.mxu0 %v536_v2 }
  0x23   :  { %463 = vmatpush3.bf16.msra.mxu1 %v501_v12 }
  0xdf   :  { %v98_v16 = vpop.f32.mrb[0].mxu0 }
  0xe0   :  { %v99_v17 = vadd.f32 %v397_v15, %v98_v16  ;;  %v446_v18 = vpop.f32.mrb[1].mxu0 }
  0xe1   :  { %v101_v19 = vpop.f32.mrb[2].mxu0 }
  0xe2   :  { %v104_v20 = vmax.f32 %v99_v17, 0.0  ;;  %v447_v21 = vpop.f32.mrb[3].mxu0 }
  0xe4   :  { %v105_v22 = vpack.c.bf16 %v104_v20, %v104_v20 }
  0xe6   :  { %465 = vmatmul.mubr.bf16.vlgmr.msra.gmra.mrb[0].mxu1 %v105_v22 }
 0x1b9   :  { %v211_v26 = vpop.f32.mrb[0].mxu1 }
 0x1ba   :  { %v212_v27 = vadd.f32 %v401_v25, %v211_v26  ;;  %v466_v28 = vpop.f32.mrb[1].mxu1 }
 0x1bb   :  { %v214_v29 = vpop.f32.mrb[2].mxu1 }
 0x1bc   :  { %v217_v30 = vmax.f32 %v212_v27, 0.0  ;;  %v467_v31 = vpop.f32.mrb[3].mxu1 }
 0x1be   :  { %v218_v33 = vpack.c.bf16 %v217_v30, %v217_v30 }
 0x1c0   :  { %477 = vmatmul.mubr.msk.bf16.vlgmr.msra.gmra.mrb[4].mxu0 %vm258_vm2, %v218_v33 }
 0x1c1   :  { %481 = vmatpush3.bf16.msra.mxu0 %v506_v32  ;;  %484 = vmatprep.mubr.msk.bf16.mxu0 %vm537_vm0, %v536_v2 }
 0x1c2   :  { %482 = vmatprep.subr.bf16.mxu0 %v536_v2 }
 0x1c5   :  { %483 = vmatpush3.bf16.msra.mxu0 %v507_v34 }
 0x293   :  { %v296_v36 = vpop.f32.mrb[4].mxu0 }
 0x294   :  { %v297_v37 = vadd.f32 %v410_v35, %v296_v36  ;;  %v478_v38 = vpop.f32.mrb[5].mxu0 }
 0x295   :  { %v299_v39 = vpop.f32.mrb[6].mxu0 }
 0x296   :  { %v302_v40 = vmax.f32 %v297_v37, 0.0  ;;  %v479_v41 = vpop.f32.mrb[7].mxu0 }
 0x298   :  { %v303_v42 = vpack.c.bf16 %v302_v40, %v302_v40  ;;  %376 = vst.msk [vmem:[#allocation3] sm:$0xff] %vm60_vm1, %v302_v40 }
 0x29a   :  { %485 = vmatmul.mubr.msk.bf16.vlgmr.msra.gmra.mrb[8].mxu0 %vm60_vm1, %v303_v42 }
 0x36d   :  { %v364_v44 = vpop.f32.mrb[8].mxu0 }
 0x36e   :  { %v365_v45 = vadd.f32 %v416_v43, %v364_v44  ;;  %v486_v46 = vpop.f32.mrb[9].mxu0 }
 0x36f   :  { %v367_v47 = vpop.f32.mrb[10].mxu0 }
 0x370   :  { %v370_v48 = vsub.f32 0.0, %v365_v45  ;;  %v487_v49 = vpop.f32.mrb[11].mxu0 }
 0x372   :  { %v371_v50 = vmul.f32 1.442695, %v370_v48 }
 0x374   :  { %508 = vpow2.f32 %v371_v50 }
 0x37e   :  { %v509_v51 = vpop.eup %508 }
 0x37f   :  { %v373_v52 = vadd.f32 1.0, %v509_v51 }
 0x381   :  { %510 = vrcp.f32 %v373_v52 }
 0x38b   :  { %v511_v53 = vpop.eup %510 }
 0x38c   :  { %378 = vrot.lane.b32.xlu0 %v511_v53, %s538_s6 }
 0x3fe   :  { %v379_v54 = vpop.permute.xlu0 %378 }
 0x3ff   :  { %382 = vst.msk [vmem:[#allocation3] sm:$0xff] %vm381_vm3, %v379_v54 }
 0x400   :  { %523 = shalt.err (!%p520_p4)
}
 0x401   :  { %s524_s24 = scalar_lea.hbm %s702_s9, 128 }
 0x402   :  { %p525_p5 = scmp.ne.s32.totalorder %s702_s9, %s524_s24  ;;  %p528_p6 = scmp.lt.u32.totalorder %s524_s24, %s702_s9 }
 0x404   :  { %p530_p7 = pnand %p528_p6, %p525_p5 }
 0x406   :  { %533 = shalt.err (!%p530_p7)
}
 0x407   :  { %392 = dma.vmem_to_hbm [thread:$0]  %s390_s21, 128, %s702_s9, [#allocation4]  }
 0x408   :  { %534 = dma.done.wait [#allocation4], 128  }
 0x409   :  { %535 = vsyncadd [#allocation4], 4294967168 }
 0x40a   :  { %396 = vsyncpa [#allocation4], 1 }

</bundles_post_ra>
